<compile_context>
chip_gen: v6e
topology: v6e:2x2x1
jax: 0.10.0
libtpu: 0.0.40
codegen_flags: <defaults>
</compile_context>

<pallas_src>
import jax
import jax.numpy as jnp
from jax.experimental import pallas as pl
from jax.experimental.pallas import tpu as pltpu

LANE = 128


def _round_up(x, m):
    return ((x + m - 1) // m) * m


def mlp_kernel(x_ref,
               w1_ref, b1_ref,
               w2_ref, b2_ref,
               w3_ref, b3_ref,
               w4_ref, b4_ref,
               out_ref):
    """One batch tile of the MLP, fully in VMEM (weights resident across tiles)."""
    # In-kernel f32 -> bf16 cast (VPU has slack under the MXU; avoids a wrapper pass).
    h = x_ref[...].astype(jnp.bfloat16)                                  # (TILE_M, in)

    h = jnp.dot(h, w1_ref[...], preferred_element_type=jnp.float32) + b1_ref[...]
    h = jnp.maximum(h, 0.0).astype(jnp.bfloat16)

    h = jnp.dot(h, w2_ref[...], preferred_element_type=jnp.float32) + b2_ref[...]
    h = jnp.maximum(h, 0.0).astype(jnp.bfloat16)

    h = jnp.dot(h, w3_ref[...], preferred_element_type=jnp.float32) + b3_ref[...]
    h = jnp.maximum(h, 0.0).astype(jnp.bfloat16)

    h = jnp.dot(h, w4_ref[...], preferred_element_type=jnp.float32) + b4_ref[...]
    # Lane-dense matmul above (W4 padded to 128 out-features); store only the
    # real output columns -> ~64x less HBM writeback than a padded f32 stream.
    out_ref[...] = h[:, :out_ref.shape[-1]].astype(out_ref.dtype)


def time_series_mlp(x, params, *, tile_m=512):
    """
    x: (batch, input_size) float32
    params: list of (W, b) with W shape (in, out), b shape (1, out)  [f32 master weights]
    Returns: (batch, output_size) float32
    """
    batch, in_size = x.shape
    out_size = params[-1][0].shape[1]
    n_layers = len(params)

    # ---- weights: bf16, head padded to a full lane for a dense final matmul ----
    out_pad = _round_up(out_size, LANE)
    casted = []
    for li, (w, b) in enumerate(params):
        if li == n_layers - 1 and w.shape[1] != out_pad:
            w = jnp.pad(w, ((0, 0), (0, out_pad - w.shape[1])))
            b = jnp.pad(b, ((0, 0), (0, out_pad - b.shape[1])))
        casted.append((w.astype(jnp.bfloat16), b.astype(jnp.float32)))

    # ---- batch tiling: adapt tile_m to the batch ------------------------------
    tile_m = max(16, _round_up(int(tile_m), 16))           # bf16 sublane granule
    tile_m = min(tile_m, _round_up(batch, 16))             # no giant tile for tiny batches
    if batch >= 32:
        # Prefer >= 2 grid tiles so v7x's second TensorCore has work.
        tile_m = min(tile_m, _round_up(pl.cdiv(batch, 2), 16))
    num_tiles = pl.cdiv(batch, tile_m)
    padded_batch = num_tiles * tile_m

    xp = x.astype(jnp.float32)
    if padded_batch != batch:
        xp = jnp.pad(xp, ((0, padded_batch - batch), (0, 0)))

    # ---- specs -----------------------------------------------------------------
    x_spec = pl.BlockSpec((tile_m, in_size), lambda i: (i, 0))
    out_spec = pl.BlockSpec((tile_m, out_size), lambda i: (i, 0))   # narrow writeback

    in_specs = [x_spec]
    flat_args = [xp]
    for w, b in casted:
        in_specs.append(pl.BlockSpec(w.shape, lambda i: (0, 0)))    # VMEM-resident weights
        in_specs.append(pl.BlockSpec(b.shape, lambda i: (0, 0)))    # VMEM-resident biases
        flat_args.extend([w, b])

    # ---- cost estimate -----------------------------------------------------------
    sizes = [in_size] + [w.shape[1] for w, _ in casted]
    flops = 2 * padded_batch * sum(a * b for a, b in zip(sizes[:-1], sizes[1:]))
    bytes_accessed = (
        xp.size * 4                                    # f32 input stream
        + padded_batch * out_size * 4                  # narrow f32 output stream
        + sum(w.size * 2 + b.size * 4 for w, b in casted)
    )

    out = pl.pallas_call(
        mlp_kernel,
        out_shape=jax.ShapeDtypeStruct((padded_batch, out_size), jnp.float32),
        grid=(num_tiles,),
        in_specs=in_specs,
        out_specs=out_spec,
        compiler_params=pltpu.CompilerParams(
            dimension_semantics=("parallel",),          # batch tiles across v7x's 2 TCs
            vmem_limit_bytes=32 * 1024 * 1024,
        ),
        cost_estimate=pl.CostEstimate(
            flops=flops, transcendentals=0, bytes_accessed=bytes_accessed),
    )(*flat_args)

    return out[:batch, :]


def init_params(key, input_size, output_size, hidden_sizes=(256, 128, 64)):
    """Deterministic init mirroring nn.Linear shapes (stored transposed: (in, out))."""
    sizes = [input_size, *hidden_sizes, output_size]
    params = []
    for i in range(len(sizes) - 1):
        fan_in, fan_out = sizes[i], sizes[i + 1]
        key, kw, kb = jax.random.split(key, 3)
        bound = 1.0 / jnp.sqrt(fan_in)
        w = jax.random.uniform(kw, (fan_in, fan_out), jnp.float32, -bound, bound)
        b = jax.random.uniform(kb, (1, fan_out), jnp.float32, -bound, bound)
        params.append((w, b))
    return params


def reference_forward_f32(x, params):
    h = x
    for i, (w, b) in enumerate(params):
        h = h @ w + b
        if i < len(params) - 1:
            h = jnp.maximum(h, 0.0)
    return h


def reference_forward_bf16(x, params):
    """Same bf16-operand / f32-accumulate recipe as the kernel, in plain JAX."""
    h = x.astype(jnp.bfloat16)
    for i, (w, b) in enumerate(params):
        h = jnp.dot(h, w.astype(jnp.bfloat16),
                    preferred_element_type=jnp.float32) + b.astype(jnp.float32)
        if i < len(params) - 1:
            h = jnp.maximum(h, 0.0).astype(jnp.bfloat16)
    return h


if __name__ == "__main__":
    key = jax.random.PRNGKey(0)
    input_size, output_size = 32, 2
    hidden_sizes = (256, 128, 64)
    params = init_params(key, input_size, output_size, hidden_sizes)

    # Small batch: single minimally padded tile (tile_m clamps to 16).
    key, kx = jax.random.split(key)
    x = jax.random.normal(kx, (8, input_size), jnp.float32)
    out = jax.block_until_ready(time_series_mlp(x, params))
    assert out.shape == (8, output_size)
    assert jnp.allclose(out, reference_forward_bf16(x, params), atol=1e-2, rtol=1e-2), \
        "mismatch vs bf16 JAX reference (batch=8)"
    assert jnp.allclose(out, reference_forward_f32(x, params), atol=5e-2, rtol=5e-2), \
        "mismatch vs f32 JAX reference (batch=8)"

    # Moderate batch: exercises batch padding + the >=2-tile (two-TensorCore) path.
    key, kx2 = jax.random.split(key)
    x2 = jax.random.normal(kx2, (48, input_size), jnp.float32)
    out2 = jax.block_until_ready(time_series_mlp(x2, params))
    assert out2.shape == (48, output_size)
    assert jnp.allclose(out2, reference_forward_bf16(x2, params), atol=1e-2, rtol=1e-2), \
        "mismatch vs bf16 JAX reference (batch=48)"

    print("KERNEL_OK")
</pallas_src>

<mosaic_0001>
module attributes {stable_mosaic.version = 11 : i64} {
  func.func @mlp_kernel(%arg0: i32, %arg1: memref<16x32xf32, #tpu.memory_space<vmem>>, %arg2: memref<32x256xbf16, #tpu.memory_space<vmem>>, %arg3: memref<1x256xf32, #tpu.memory_space<vmem>>, %arg4: memref<256x128xbf16, #tpu.memory_space<vmem>>, %arg5: memref<1x128xf32, #tpu.memory_space<vmem>>, %arg6: memref<128x64xbf16, #tpu.memory_space<vmem>>, %arg7: memref<1x64xf32, #tpu.memory_space<vmem>>, %arg8: memref<64x128xbf16, #tpu.memory_space<vmem>>, %arg9: memref<1x128xf32, #tpu.memory_space<vmem>>, %arg10: memref<16x2xf32, #tpu.memory_space<vmem>>) attributes {dimension_semantics = [#tpu.dimension_semantics<parallel>], iteration_bounds = array<i64: 1>, scalar_prefetch = 0 : i64, scratch_operands = 0 : i64, tpu.core_type = #tpu.core_type<tc>, window_params = [{transform_indices = @transform_0, window_bounds = array<i64: 16, 32>}, {pipeline_mode = #tpu.pipeline_mode<synchronous>, transform_indices = @transform_1, window_bounds = array<i64: 32, 256>}, {pipeline_mode = #tpu.pipeline_mode<synchronous>, transform_indices = @transform_2, window_bounds = array<i64: 1, 256>}, {pipeline_mode = #tpu.pipeline_mode<synchronous>, transform_indices = @transform_3, window_bounds = array<i64: 256, 128>}, {pipeline_mode = #tpu.pipeline_mode<synchronous>, transform_indices = @transform_4, window_bounds = array<i64: 1, 128>}, {pipeline_mode = #tpu.pipeline_mode<synchronous>, transform_indices = @transform_5, window_bounds = array<i64: 128, 64>}, {pipeline_mode = #tpu.pipeline_mode<synchronous>, transform_indices = @transform_6, window_bounds = array<i64: 1, 64>}, {pipeline_mode = #tpu.pipeline_mode<synchronous>, transform_indices = @transform_7, window_bounds = array<i64: 64, 128>}, {pipeline_mode = #tpu.pipeline_mode<synchronous>, transform_indices = @transform_8, window_bounds = array<i64: 1, 128>}, {transform_indices = @transform_9, window_bounds = array<i64: 16, 2>}]} {
    %c0 = arith.constant 0 : index
    %c0_0 = arith.constant 0 : index
    %0 = vector.load %arg1[%c0, %c0_0] : memref<16x32xf32, #tpu.memory_space<vmem>>, vector<16x32xf32>
    %1 = arith.truncf %0 : vector<16x32xf32> to vector<16x32xbf16>
    %c0_1 = arith.constant 0 : index
    %c0_2 = arith.constant 0 : index
    %2 = vector.load %arg2[%c0_1, %c0_2] : memref<32x256xbf16, #tpu.memory_space<vmem>>, vector<32x256xbf16>
    %cst = arith.constant dense<0.000000e+00> : vector<16x256xf32>
    %3 = tpu.matmul %1, %2, %cst {dimension_numbers = #tpu.dot_dimension_numbers<[1], [0], [0], [1], [0, 0, 1, 1], [], []>} : vector<16x32xbf16>, vector<32x256xbf16>, vector<16x256xf32> -> vector<16x256xf32>
    %c0_3 = arith.constant 0 : index
    %c0_4 = arith.constant 0 : index
    %4 = vector.load %arg3[%c0_3, %c0_4] : memref<1x256xf32, #tpu.memory_space<vmem>>, vector<1x256xf32>
    %5 = vector.broadcast %4 : vector<1x256xf32> to vector<16x256xf32>
    %6 = arith.addf %3, %5 : vector<16x256xf32>
    %cst_5 = arith.constant 0.000000e+00 : f32
    %7 = vector.broadcast %cst_5 : f32 to vector<16x256xf32>
    %8 = arith.maximumf %6, %7 : vector<16x256xf32>
    %9 = arith.truncf %8 : vector<16x256xf32> to vector<16x256xbf16>
    %c0_6 = arith.constant 0 : index
    %c0_7 = arith.constant 0 : index
    %10 = vector.load %arg4[%c0_6, %c0_7] : memref<256x128xbf16, #tpu.memory_space<vmem>>, vector<256x128xbf16>
    %cst_8 = arith.constant dense<0.000000e+00> : vector<16x128xf32>
    %11 = tpu.matmul %9, %10, %cst_8 {dimension_numbers = #tpu.dot_dimension_numbers<[1], [0], [0], [1], [0, 0, 1, 1], [], []>} : vector<16x256xbf16>, vector<256x128xbf16>, vector<16x128xf32> -> vector<16x128xf32>
    %c0_9 = arith.constant 0 : index
    %c0_10 = arith.constant 0 : index
    %12 = vector.load %arg5[%c0_9, %c0_10] : memref<1x128xf32, #tpu.memory_space<vmem>>, vector<1x128xf32>
    %13 = vector.broadcast %12 : vector<1x128xf32> to vector<16x128xf32>
    %14 = arith.addf %11, %13 : vector<16x128xf32>
    %cst_11 = arith.constant 0.000000e+00 : f32
    %15 = vector.broadcast %cst_11 : f32 to vector<16x128xf32>
    %16 = arith.maximumf %14, %15 : vector<16x128xf32>
    %17 = arith.truncf %16 : vector<16x128xf32> to vector<16x128xbf16>
    %c0_12 = arith.constant 0 : index
    %c0_13 = arith.constant 0 : index
    %18 = vector.load %arg6[%c0_12, %c0_13] : memref<128x64xbf16, #tpu.memory_space<vmem>>, vector<128x64xbf16>
    %cst_14 = arith.constant dense<0.000000e+00> : vector<16x64xf32>
    %19 = tpu.matmul %17, %18, %cst_14 {dimension_numbers = #tpu.dot_dimension_numbers<[1], [0], [0], [1], [0, 0, 1, 1], [], []>} : vector<16x128xbf16>, vector<128x64xbf16>, vector<16x64xf32> -> vector<16x64xf32>
    %c0_15 = arith.constant 0 : index
    %c0_16 = arith.constant 0 : index
    %20 = vector.load %arg7[%c0_15, %c0_16] : memref<1x64xf32, #tpu.memory_space<vmem>>, vector<1x64xf32>
    %21 = vector.broadcast %20 : vector<1x64xf32> to vector<16x64xf32>
    %22 = arith.addf %19, %21 : vector<16x64xf32>
    %cst_17 = arith.constant 0.000000e+00 : f32
    %23 = vector.broadcast %cst_17 : f32 to vector<16x64xf32>
    %24 = arith.maximumf %22, %23 : vector<16x64xf32>
    %25 = arith.truncf %24 : vector<16x64xf32> to vector<16x64xbf16>
    %c0_18 = arith.constant 0 : index
    %c0_19 = arith.constant 0 : index
    %26 = vector.load %arg8[%c0_18, %c0_19] : memref<64x128xbf16, #tpu.memory_space<vmem>>, vector<64x128xbf16>
    %cst_20 = arith.constant dense<0.000000e+00> : vector<16x128xf32>
    %27 = tpu.matmul %25, %26, %cst_20 {dimension_numbers = #tpu.dot_dimension_numbers<[1], [0], [0], [1], [0, 0, 1, 1], [], []>} : vector<16x64xbf16>, vector<64x128xbf16>, vector<16x128xf32> -> vector<16x128xf32>
    %c0_21 = arith.constant 0 : index
    %c0_22 = arith.constant 0 : index
    %28 = vector.load %arg9[%c0_21, %c0_22] : memref<1x128xf32, #tpu.memory_space<vmem>>, vector<1x128xf32>
    %29 = vector.broadcast %28 : vector<1x128xf32> to vector<16x128xf32>
    %30 = arith.addf %27, %29 : vector<16x128xf32>
    %31 = vector.extract_strided_slice %30 {offsets = [0, 0], sizes = [16, 2], strides = [1, 1]} : vector<16x128xf32> to vector<16x2xf32>
    %c0_23 = arith.constant 0 : index
    %c0_24 = arith.constant 0 : index
    %32 = vector.load %arg10[%c0_23, %c0_24] : memref<16x2xf32, #tpu.memory_space<vmem>>, vector<16x2xf32>
    tpu.vector_store %arg10[%c0_23, %c0_24], %31 {strides = array<i32>} : memref<16x2xf32, #tpu.memory_space<vmem>>, vector<16x2xf32>,
    return
  }
  func.func @transform_0(%arg0: i32) -> (i32, i32) {
    %c0_i32 = arith.constant 0 : i32
    %c0_i32_0 = arith.constant 0 : i32
    return %arg0, %c0_i32 : i32, i32
  }
  func.func @transform_1(%arg0: i32) -> (i32, i32) {
    %c0_i32 = arith.constant 0 : i32
    %c0_i32_0 = arith.constant 0 : i32
    %c0_i32_1 = arith.constant 0 : i32
    return %c0_i32, %c0_i32_0 : i32, i32
  }
  func.func @transform_2(%arg0: i32) -> (i32, i32) {
    %c0_i32 = arith.constant 0 : i32
    %c0_i32_0 = arith.constant 0 : i32
    %c0_i32_1 = arith.constant 0 : i32
    return %c0_i32, %c0_i32_0 : i32, i32
  }
  func.func @transform_3(%arg0: i32) -> (i32, i32) {
    %c0_i32 = arith.constant 0 : i32
    %c0_i32_0 = arith.constant 0 : i32
    %c0_i32_1 = arith.constant 0 : i32
    return %c0_i32, %c0_i32_0 : i32, i32
  }
  func.func @transform_4(%arg0: i32) -> (i32, i32) {
    %c0_i32 = arith.constant 0 : i32
    %c0_i32_0 = arith.constant 0 : i32
    %c0_i32_1 = arith.constant 0 : i32
    return %c0_i32, %c0_i32_0 : i32, i32
  }
  func.func @transform_5(%arg0: i32) -> (i32, i32) {
    %c0_i32 = arith.constant 0 : i32
    %c0_i32_0 = arith.constant 0 : i32
    %c0_i32_1 = arith.constant 0 : i32
    return %c0_i32, %c0_i32_0 : i32, i32
  }
  func.func @transform_6(%arg0: i32) -> (i32, i32) {
    %c0_i32 = arith.constant 0 : i32
    %c0_i32_0 = arith.constant 0 : i32
    %c0_i32_1 = arith.constant 0 : i32
    return %c0_i32, %c0_i32_0 : i32, i32
  }
  func.func @transform_7(%arg0: i32) -> (i32, i32) {
    %c0_i32 = arith.constant 0 : i32
    %c0_i32_0 = arith.constant 0 : i32
    %c0_i32_1 = arith.constant 0 : i32
    return %c0_i32, %c0_i32_0 : i32, i32
  }
  func.func @transform_8(%arg0: i32) -> (i32, i32) {
    %c0_i32 = arith.constant 0 : i32
    %c0_i32_0 = arith.constant 0 : i32
    %c0_i32_1 = arith.constant 0 : i32
    return %c0_i32, %c0_i32_0 : i32, i32
  }
  func.func @transform_9(%arg0: i32) -> (i32, i32) {
    %c0_i32 = arith.constant 0 : i32
    %c0_i32_0 = arith.constant 0 : i32
    return %arg0, %c0_i32 : i32, i32
  }
}

</mosaic_0001>

<bundles_post_ra>
// kernel: tpu_custom_call.1
= control target key start
LH: loop header
LB: loop body
LE: loop exit
PB: predicated region body
PF: predicated region fallthrough
CT: control target
= control target key end

     0   :  { %14 = vsyncpa [#allocation3], 0  ;;  %s692_s30 = smov [#allocation2]   ;;  %s837_s0 = inlined_call_operand.vmem [shape: f32[16,32], index: 0, kind: input, shape index: {}]   ;;  %s838_s1 = inlined_call_operand.vmem [shape: bf16[32,256], index: 1, kind: input, shape index: {}]   ;;  %s839_s2 = inlined_call_operand.vmem [shape: f32[1,256], index: 2, kind: input, shape index: {}]   ;;  %s840_s3 = inlined_call_operand.hbm [shape: bf16[256,128], index: 3, kind: input, shape index: {}]   ;;  %s841_s4 = inlined_call_operand.vmem [shape: f32[1,128], index: 4, kind: input, shape index: {}]   ;;  %s842_s5 = inlined_call_operand.vmem [shape: bf16[128,64], index: 5, kind: input, shape index: {}]   ;;  %s843_s6 = inlined_call_operand.vmem [shape: f32[1,64], index: 6, kind: input, shape index: {}]   ;;  %s844_s7 = inlined_call_operand.vmem [shape: bf16[64,128], index: 7, kind: input, shape index: {}]   ;;  %s845_s8 = inlined_call_operand.vmem [shape: f32[1,128], index: 8, kind: input, shape index: {}]   ;;  %s846_s9 = inlined_call_operand.vmem [shape: f32[16,2], index: 9, kind: output, shape index: {}]  }
   0x1   :  { %s26_s10 = sshll.u32 %s692_s30, 4  ;;  %s27_s10 = int_to_ptr.vmem [resolvable:$true] %s26_s10 }
   0x2   :  { %s678_s11 = scalar_lea.vmem %s27_s10, 2048  ;;  %p683_p1 = scmp.lt.s32.totalorder %s27_s10, %s27_s10 }
   0x3   :  { %p679_p0 = scmp.ne.s32.totalorder %s27_s10, %s678_s11  ;;  %p684_p2 = scmp.lt.s32.totalorder %s678_s11, %s678_s11 }
   0x5   :  { %p685_p3 = por %p684_p2, %p683_p1 }
   0x7   :  { %p686_p4 = pnand %p685_p3, %p679_p0 }
   0x9   :  { %689 = shalt.err (!%p686_p4)
}
   0xa   :  { %s693_s12 = smov 64   ;;  %s694_s13 = smov 4  }
   0xb   :  { %32 = dma.hbm_to_vmem [thread:$0]  %s840_s3, 2048, %s27_s10, [#allocation3], %s693_s12, %s693_s12, %s694_s13  }
   0xc   :  { %690 = dma.done.wait [#allocation3], 2048  }
   0xd   :  { %691 = vsyncadd [#allocation3], 4294965248  ;;  %v695_v0 = vmov 0   ;;  %v636_v1 = vld [vmem:[%s838_s1 + $0x14] ss:$8 sps:$4 sm:$0xff]   ;;  %v47_v5 = vld [vmem:[%s837_s0] sm:$0xff]  ;;  %v56_v29 = vlaneseq }
   0xe   :  { %122 = vmatprep.mubr.bf16.mxu0 %v695_v0  ;;  %v638_v2 = vld [vmem:[%s838_s1 + $0x10] ss:$8 sps:$4 sm:$0xff]   ;;  %102 = vmatprep.subr.bf16.mxu0 %v636_v1  ;;  %v639_v3 = vld [vmem:[%s838_s1 + $0x4] ss:$8 sps:$4 sm:$0xff]   ;;  %v641_v4 = vld [vmem:[%s838_s1] ss:$8 sps:$4 sm:$0xff]  }
   0xf   :  { %103 = vmatpush1.bf16.msra.mxu0 %v638_v2  ;;  %v48_v6 = vld [vmem:[%s837_s0 + $0x8] sm:$0xff]  ;;  %v642_v7 = vld [vmem:[#allocation2 + $0x78] sm:$0xff]   ;;  %v644_v10 = vld [vmem:[#allocation2 + $0x70] sm:$0xff]   ;;  %vm86_vm0 = vcmask 261120   ;;  %v696_v25 = vmov 0.0   ;;  %v57_v30 = vshrl.u32 %v56_v29, 7 }
  0x10   :  { %104 = vmatprep.subr.bf16.mxu0 %v639_v3  ;;  %v643_v8 = vld [vmem:[#allocation2 + $0x38] sm:$0xff]   ;;  %v49_v9 = vpack.c.bf16 %v48_v6, %v47_v5  ;;  %562 = vmatprep.subr.bf16.mxu1 %v642_v7  ;;  %v645_v11 = vld [vmem:[#allocation2 + $0x30] sm:$0xff]   ;;  %v646_v12 = vld [vmem:[#allocation2 + $0x68] sm:$0xff]   ;;  %vm697_vm1 = vmmov 0   ;;  %vm472_vm2 = vcmask 523264   ;;  %vm517_vm3 = vcmask 15360  }
  0x11   :  { %563 = vmatpush3.bf16.msra.mxu1 %v643_v8  ;;  %v647_v13 = vld [vmem:[#allocation2 + $0x28] sm:$0xff]   ;;  %v648_v14 = vld [vmem:[#allocation2 + $0x60] sm:$0xff]   ;;  %v650_v16 = vld [vmem:[#allocation2 + $0x58] sm:$0xff]   ;;  %v62_v31 = vsub.s32 1, %v57_v30  ;;  %v58_v32 = vsub.s32 0, %v57_v30 }
  0x12   :  { %564 = vmatprep.subr.bf16.mxu1 %v644_v10  ;;  %v649_v15 = vld [vmem:[#allocation2 + $0x20] sm:$0xff]   ;;  %v651_v17 = vld [vmem:[#allocation2 + $0x18] sm:$0xff]   ;;  %v652_v18 = vld [vmem:[#allocation2 + $0x50] sm:$0xff]  }
  0x13   :  { %105 = vmatpush1.bf16.msra.mxu0 %v641_v4  ;;  %v653_v19 = vld [vmem:[#allocation2 + $0x10] sm:$0xff]   ;;  %v654_v20 = vld [vmem:[#allocation2 + $0x48] sm:$0xff]   ;;  %v656_v22 = vld [vmem:[#allocation2 + $0x40] sm:$0xff]  }
  0x14   :  { %v655_v21 = vld [vmem:[#allocation2 + $0x8] sm:$0xff]   ;;  %v657_v23 = vld [vmem:[#allocation2] sm:$0xff]   ;;  %v658_v24 = vld [vmem:[%s842_s5 + $0x38] sm:$0xff]   ;;  %598 = vmatprep.subr.bf16.mxu0 %v696_v25 }
  0x15   :  { %565 = vmatpush3.bf16.msra.mxu1 %v645_v11  ;;  %v659_v26 = vld [vmem:[%s842_s5 + $0x30] sm:$0xff]   ;;  %v660_v27 = vld [vmem:[%s842_s5 + $0x28] sm:$0xff]   ;;  %v661_v28 = vld [vmem:[%s842_s5 + $0x20] sm:$0xff]  }
  0x16   :  { %529 = vmatmul.mubr.msk.bf16.vlgmr.msra.gmra.mxu0 %vm86_vm0, %v49_v9  ;;  %566 = vmatprep.subr.bf16.mxu1 %v646_v12  ;;  %v54_v33 = vld [vmem:[%s839_s2] sm:$0x3]  ;;  %v662_v50 = vld [vmem:[%s842_s5 + $0x18] sm:$0xff]   ;;  %v663_v51 = vld [vmem:[%s842_s5 + $0x10] sm:$0xff]  }
  0x17   :  { %599 = vmatpush3.bf16.msra.mxu0 %v658_v24  ;;  %v63_v35 = vrot.slane %v54_v33, %v62_v31  ;;  %v59_v36 = vrot.slane %v54_v33, %v58_v32  ;;  %v664_v52 = vld [vmem:[%s842_s5 + $0x8] sm:$0xff]   ;;  %v665_v53 = vld [vmem:[%s842_s5] sm:$0xff]   ;;  %614 = vmatprep.mubr.msk.bf16.mxu0 %vm697_vm1, %v696_v25  ;;  %v666_v54 = vld [vmem:[%s844_s7 + $0x18] sm:$0xff]  }
  0x18   :  { %600 = vmatprep.subr.bf16.mxu0 %v696_v25  ;;  %v530_v58 = vld [vmem:[%s841_s4] ss:$0 sm:$0xff]  ;;  %v667_v3 = vld [vmem:[%s844_s7 + $0x10] sm:$0xff]   ;;  %v668_v4 = vld [vmem:[%s844_s7 + $0x8] sm:$0xff]  }
  0x19   :  { %567 = vmatpush3.bf16.msra.mxu1 %v647_v13  ;;  %v669_v5 = vld [vmem:[%s844_s7] sm:$0xff]  }
  0x1a   :  { %568 = vmatprep.subr.bf16.mxu1 %v648_v14  ;;  %v547_v6 = vld [vmem:[%s843_s6] ss:$0 sm:$0xff] }
  0x1b   :  { %601 = vmatpush3.bf16.msra.mxu0 %v659_v26 }
  0x1c   :  { %602 = vmatprep.subr.bf16.mxu0 %v696_v25 }
  0x1d   :  { %569 = vmatpush3.bf16.msra.mxu1 %v649_v15 }
  0x1e   :  { %570 = vmatprep.subr.bf16.mxu1 %v650_v16  ;;  %v556_v16 = vld [vmem:[%s845_s8] ss:$0 sm:$0xff] }
  0x1f   :  { %603 = vmatpush3.bf16.msra.mxu0 %v660_v27 }
  0x20   :  { %604 = vmatprep.subr.bf16.mxu0 %v696_v25 }
  0x21   :  { %571 = vmatpush3.bf16.msra.mxu1 %v651_v17 }
  0x22   :  { %572 = vmatprep.subr.bf16.mxu1 %v652_v18 }
  0x23   :  { %605 = vmatpush3.bf16.msra.mxu0 %v661_v28 }
  0x24   :  { %606 = vmatprep.subr.bf16.mxu0 %v696_v25 }
  0x25   :  { %573 = vmatpush3.bf16.msra.mxu1 %v653_v19 }
  0x26   :  { %574 = vmatprep.subr.bf16.mxu1 %v654_v20 }
  0x27   :  { %607 = vmatpush3.bf16.msra.mxu0 %v662_v50 }
  0x28   :  { %608 = vmatprep.subr.bf16.mxu0 %v696_v25 }
  0x29   :  { %575 = vmatpush3.bf16.msra.mxu1 %v655_v21 }
  0x2a   :  { %576 = vmatprep.subr.bf16.mxu1 %v656_v22 }
  0x2b   :  { %609 = vmatpush3.bf16.msra.mxu0 %v663_v51 }
  0x2c   :  { %610 = vmatprep.subr.bf16.mxu0 %v696_v25 }
  0x2d   :  { %577 = vmatpush3.bf16.msra.mxu1 %v657_v23 }
  0x2e   :  { %618 = vmatprep.subr.bf16.mxu1 %v696_v25 }
  0x2f   :  { %611 = vmatpush3.bf16.msra.mxu0 %v664_v52 }
  0x30   :  { %612 = vmatprep.subr.bf16.mxu0 %v696_v25 }
  0x33   :  { %613 = vmatpush3.bf16.msra.mxu0 %v665_v53 }
  0xd6   :  { %v124_v34 = vpop.f32.mrf.mxu0 }
  0xd7   :  { %v125_v41 = vadd.f32 %v124_v34, %v59_v36 }
  0xd8   :  { %v126_v37 = vpop.f32.mrf.mxu0 }
  0xd9   :  { %v127_v39 = vadd.f32 %v126_v37, %v63_v35  ;;  %v133_v47 = vmax.f32 %v125_v41, 0.0 }
  0xda   :  { %v128_v38 = vpop.f32.mrf.mxu0 }
  0xdb   :  { %v129_v40 = vadd.f32 %v128_v38, %v59_v36  ;;  %v134_v45 = vmax.f32 %v127_v39, 0.0 }
  0xdc   :  { %v130_v42 = vpop.f32.mrf.mxu0 }
  0xdd   :  { %v131_v43 = vadd.f32 %v130_v42, %v63_v35  ;;  %v135_v44 = vmax.f32 %v129_v40, 0.0 }
  0xdf   :  { %v136_v46 = vmax.f32 %v131_v43, 0.0  ;;  %v137_v49 = vpack.c.bf16 %v135_v44, %v133_v47 }
  0xe1   :  { %v138_v48 = vpack.c.bf16 %v136_v46, %v134_v45 }
  0xe3   :  { %306 = vmatprep.mubr.bf16.mxu1 %v138_v48 }
  0xe4   :  { %307 = vmatmul.mubr.bf16.vlgmr.msra.gmra.mxu1 %v137_v49 }
  0xe5   :  { %626 = vmatprep.mubr.msk.bf16.mxu1 %vm697_vm1, %v696_v25  ;;  %619 = vmatpush3.bf16.msra.mxu1 %v666_v54 }
  0xe6   :  { %620 = vmatprep.subr.bf16.mxu1 %v696_v25 }
  0xe9   :  { %621 = vmatpush3.bf16.msra.mxu1 %v667_v3 }
  0xea   :  { %622 = vmatprep.subr.bf16.mxu1 %v696_v25 }
  0xed   :  { %623 = vmatpush3.bf16.msra.mxu1 %v668_v4 }
  0xee   :  { %624 = vmatprep.subr.bf16.mxu1 %v696_v25 }
  0xf1   :  { %625 = vmatpush3.bf16.msra.mxu1 %v669_v5 }
 0x1a4   :  { %v578_v55 = vpop.f32.mrf.mxu1 }
 0x1a6   :  { %v579_v56 = vpop.f32.mrf.mxu1 }
 0x1a7   :  { %v580_v57 = vadd.f32 %v579_v56, %v578_v55 }
 0x1a8   :  { %v581_v59 = vpop.f32.mrf.mxu1 }
 0x1a9   :  { %v309_v61 = vadd.f32 %v580_v57, %v530_v58 }
 0x1aa   :  { %v582_v60 = vpop.f32.mrf.mxu1 }
 0x1ab   :  { %v583_v62 = vadd.f32 %v582_v60, %v581_v59  ;;  %v315_v0 = vmax.f32 %v309_v61, 0.0 }
 0x1ad   :  { %v312_v63 = vadd.f32 %v583_v62, %v530_v58 }
 0x1af   :  { %v316_v1 = vmax.f32 %v312_v63, 0.0 }
 0x1b1   :  { %v317_v2 = vpack.c.bf16 %v316_v1, %v315_v0 }
 0x1b3   :  { %615 = vmatmul.mubr.bf16.vlgmr.msra.gmra.mxu0 %v317_v2 }
 0x273   :  { %v423_v7 = vpop.f32.mrf.mxu0 }
 0x274   :  { %v424_v9 = vadd.f32 %v547_v6, %v423_v7 }
 0x275   :  { %v616_v8 = vpop.f32.mrf.mxu0 }
 0x276   :  { %v430_v13 = vmax.f32 %v424_v9, 0.0 }
 0x277   :  { %v426_v10 = vpop.f32.mrf.mxu0 }
 0x278   :  { %v427_v11 = vadd.f32 %v547_v6, %v426_v10 }
 0x279   :  { %v617_v12 = vpop.f32.mrf.mxu0 }
 0x27a   :  { %v431_v14 = vmax.f32 %v427_v11, 0.0 }
 0x27c   :  { %v432_v15 = vpack.c.bf16 %v431_v14, %v430_v13 }
 0x27e   :  { %627 = vmatmul.mubr.msk.bf16.vlgmr.msra.gmra.mxu1 %vm472_vm2, %v432_v15 }
 0x33e   :  { %v510_v17 = vpop.f32.mrf.mxu1 }
 0x33f   :  { %v511_v18 = vadd.f32 %v556_v16, %v510_v17 }
 0x340   :  { %v628_v19 = vpop.f32.mrf.mxu1 }
 0x341   :  { %518 = vst.msk [vmem:[%s846_s9] sm:$0xff] %vm517_vm3, %v511_v18 }
 0x342   :  { %v513_v20 = vpop.f32.mrf.mxu1 }
 0x343   :  { %v514_v21 = vadd.f32 %v556_v16, %v513_v20 }
 0x344   :  { %v629_v22 = vpop.f32.mrf.mxu1 }
 0x345   :  { %519 = vst.msk [vmem:[%s846_s9 + $0x8] sm:$0xff] %vm517_vm3, %v514_v21 }
 0x346   :  { %524 = vsyncpa [#allocation3], 1 }

</bundles_post_ra>
